<compile_context>
chip_gen: v5e
topology: v5e:2x2
jax: 0.10.0
libtpu: 0.0.40
codegen_flags: <defaults>
</compile_context>

<pallas_src>
import functools

import jax
import jax.numpy as jnp
from jax import lax
from jax.experimental import pallas as pl
from jax.experimental.pallas import tpu as pltpu


def _head_kernel(x_ref, wd_ref, bd_ref, wo_ref, bo_ref, out_ref, acc_ref,
                 *, seq_len, ts):
    # x_ref: (tb, ts, H)  wd_ref: (H, H) torch-layout (out, in)  bd_ref: (1, H)
    # wo_ref: (L, H) torch-layout (out, in)  bo_ref: (1, L)
    # out_ref: (tb, L)    acc_ref: (tb, H) f32 running sum over S.
    s = pl.program_id(1)

    @pl.when(s == 0)
    def _init():
        acc_ref[...] = jnp.zeros_like(acc_ref)

    # Hot loop: pure load + f32 accumulate (bandwidth bound).
    x = x_ref[...].astype(jnp.float32)                        # (tb, ts, H)
    if seq_len % ts != 0:
        # Mask padded rows of the ragged last S tile so they don't pollute the
        # mean. Emitted only when S is not a multiple of the tile size.
        row = lax.broadcasted_iota(jnp.int32, x.shape, 1) + s * ts
        x = jnp.where(row < seq_len, x, 0.0)
    acc_ref[...] += jnp.sum(x, axis=1)                        # (tb, H)

    @pl.when(s == pl.num_programs(1) - 1)
    def _finalize():
        # Divide once by the full S (compile-time constant), not per tile.
        pooled = acc_ref[...] * (1.0 / seq_len)               # (tb, H)

        # TODO(synk): dropout is identity at inference; training-mode
        # stochastic dropout is intentionally not implemented.

        # dense: pooled @ W_dense.T + b_dense, then tanh. The weight is kept in
        # PyTorch (out, in) layout and contracted on its second axis.
        h = lax.dot_general(
            pooled, wd_ref[...],
            dimension_numbers=(((1,), (1,)), ((), ())),
            preferred_element_type=jnp.float32) + bd_ref[...]
        h = jnp.tanh(h)

        # out_proj: h @ W_out.T + b_out.
        logits = lax.dot_general(
            h, wo_ref[...],
            dimension_numbers=(((1,), (1,)), ((), ())),
            preferred_element_type=jnp.float32) + bo_ref[...]
        out_ref[...] = logits.astype(out_ref.dtype)


def t5_encoder_classification_head(hidden_states, w_dense, b_dense,
                                   w_out, b_out, *, x_tile_bytes=4 << 20):
    """hidden_states: (B, S, H).  w_dense: (H, H) PyTorch-layout (out, in);
    w_out: (L, H) PyTorch-layout (out, in)."""
    B, S, H = hidden_states.shape
    L = w_out.shape[0]
    itemsize = jnp.dtype(hidden_states.dtype).itemsize

    # Batch tile: full B if small, else a multiple of 8 (sublane-friendly for
    # the (tb, L) output block).
    tb = B if B <= 8 else 8

    # Sequence tile: as large as fits the x-tile byte budget, multiple of 8
    # (or full S if S is small).
    ts_cap = max(8, (x_tile_bytes // max(1, tb * H * itemsize)) // 8 * 8)
    ts = S if S <= ts_cap else ts_cap

    grid = (pl.cdiv(B, tb), pl.cdiv(S, ts))

    bd = b_dense.reshape(1, H)
    bo = b_out.reshape(1, L)

    kernel = functools.partial(_head_kernel, seq_len=S, ts=ts)

    cost = pl.CostEstimate(
        flops=2 * B * H * (H + L),
        transcendentals=B * H,
        bytes_accessed=B * S * H * itemsize + (H * H + L * H) * 4 + B * L * 4,
    )

    return pl.pallas_call(
        kernel,
        out_shape=jax.ShapeDtypeStruct((B, L), jnp.float32),
        grid_spec=pltpu.PrefetchScalarGridSpec(
            num_scalar_prefetch=0,
            grid=grid,
            in_specs=[
                # Streamed (tb, ts, H) tiles of hidden_states.
                pl.BlockSpec((tb, ts, H), lambda b, s: (b, s, 0)),
                # Weights / biases: constant block index -> stay VMEM-resident.
                pl.BlockSpec((H, H), lambda b, s: (0, 0)),
                pl.BlockSpec((1, H), lambda b, s: (0, 0)),
                pl.BlockSpec((L, H), lambda b, s: (0, 0)),
                pl.BlockSpec((1, L), lambda b, s: (0, 0)),
            ],
            out_specs=pl.BlockSpec((tb, L), lambda b, s: (b, 0)),
            scratch_shapes=[pltpu.VMEM((tb, H), jnp.float32)],
        ),
        compiler_params=pltpu.CompilerParams(
            # Batch tiles are independent (megacore-shardable on v7x);
            # S is the reduction axis and must stay sequential + innermost.
            dimension_semantics=("parallel", "arbitrary"),
            vmem_limit_bytes=32 * 1024 * 1024,
        ),
        cost_estimate=cost,
    )(hidden_states, w_dense, bd, w_out, bo)


def _reference(hidden_states, w_dense, b_dense, w_out, b_out):
    pooled = jnp.mean(hidden_states.astype(jnp.float32), axis=1)
    h = jnp.tanh(pooled @ w_dense.T + b_dense)
    return h @ w_out.T + b_out


if __name__ == "__main__":
    # Small shapes consistent with the module's forward:
    #   batch=2, seq_len=8, hidden_size=32, num_labels=5
    B, S, H, L = 2, 8, 32, 5

    key = jax.random.PRNGKey(0)
    k_x, k_wd, k_bd, k_wo, k_bo = jax.random.split(key, 5)

    hidden_states = jax.random.normal(k_x, (B, S, H), dtype=jnp.float32)
    # Deterministic parameter init (shapes from nn.Linear in __init__).
    w_dense = jax.random.normal(k_wd, (H, H), dtype=jnp.float32) * 0.02
    b_dense = jax.random.normal(k_bd, (H,), dtype=jnp.float32) * 0.02
    w_out = jax.random.normal(k_wo, (L, H), dtype=jnp.float32) * 0.02
    b_out = jax.random.normal(k_bo, (L,), dtype=jnp.float32) * 0.02

    out = t5_encoder_classification_head(hidden_states, w_dense, b_dense,
                                         w_out, b_out)
    out = jax.block_until_ready(out)

    ref = _reference(hidden_states, w_dense, b_dense, w_out, b_out)
    assert out.shape == (B, L), out.shape
    assert jnp.allclose(out, ref, atol=1e-5, rtol=1e-5), (out, ref)

    print("KERNEL_OK")
</pallas_src>

<mosaic_0001>
module attributes {stable_mosaic.version = 11 : i64} {
  func.func @_head_kernel(%arg0: i32, %arg1: i32, %arg2: memref<2x8x32xf32, #tpu.memory_space<vmem>>, %arg3: memref<32x32xf32, #tpu.memory_space<vmem>>, %arg4: memref<1x32xf32, #tpu.memory_space<vmem>>, %arg5: memref<5x32xf32, #tpu.memory_space<vmem>>, %arg6: memref<1x5xf32, #tpu.memory_space<vmem>>, %arg7: memref<2x5xf32, #tpu.memory_space<vmem>>, %arg8: memref<2x32xf32, #tpu.memory_space<vmem>>) attributes {dimension_semantics = [#tpu.dimension_semantics<parallel>, #tpu.dimension_semantics<arbitrary>], iteration_bounds = array<i64: 1, 1>, scalar_prefetch = 0 : i64, scratch_operands = 1 : i64, tpu.core_type = #tpu.core_type<tc>, window_params = [{transform_indices = @transform_0, window_bounds = array<i64: 2, 8, 32>}, {pipeline_mode = #tpu.pipeline_mode<synchronous>, transform_indices = @transform_1, window_bounds = array<i64: 32, 32>}, {pipeline_mode = #tpu.pipeline_mode<synchronous>, transform_indices = @transform_2, window_bounds = array<i64: 1, 32>}, {pipeline_mode = #tpu.pipeline_mode<synchronous>, transform_indices = @transform_3, window_bounds = array<i64: 5, 32>}, {pipeline_mode = #tpu.pipeline_mode<synchronous>, transform_indices = @transform_4, window_bounds = array<i64: 1, 5>}, {transform_indices = @transform_5, window_bounds = array<i64: 2, 5>}]} {
    %c0_i32 = arith.constant 0 : i32
    %0 = arith.cmpi eq, %arg1, %c0_i32 : i32
    %1 = arith.extui %0 : i1 to i32
    %c0_i32_0 = arith.constant 0 : i32
    %2 = arith.cmpi ne, %1, %c0_i32_0 : i32
    scf.if %2 {
      %cst_9 = arith.constant 0.000000e+00 : f32
      %11 = vector.broadcast %cst_9 : f32 to vector<2x32xf32>
      %c0_10 = arith.constant 0 : index
      %c0_11 = arith.constant 0 : index
      %12 = vector.load %arg8[%c0_10, %c0_11] : memref<2x32xf32, #tpu.memory_space<vmem>>, vector<2x32xf32>
      tpu.vector_store %arg8[%c0_10, %c0_11], %11 {strides = array<i32>} : memref<2x32xf32, #tpu.memory_space<vmem>>, vector<2x32xf32>,
    } else {
    }
    %c0 = arith.constant 0 : index
    %c0_1 = arith.constant 0 : index
    %c0_2 = arith.constant 0 : index
    %3 = vector.load %arg2[%c0, %c0_1, %c0_2] : memref<2x8x32xf32, #tpu.memory_space<vmem>>, vector<2x8x32xf32>
    %c0_3 = arith.constant 0 : index
    %c0_4 = arith.constant 0 : index
    %4 = vector.load %arg8[%c0_3, %c0_4] : memref<2x32xf32, #tpu.memory_space<vmem>>, vector<2x32xf32>
    %cst = arith.constant dense<0.000000e+00> : vector<2x32xf32>
    %5 = vector.multi_reduction <add>, %3, %cst [1] : vector<2x8x32xf32> to vector<2x32xf32>
    %6 = arith.addf %4, %5 : vector<2x32xf32>
    %c0_5 = arith.constant 0 : index
    %c0_6 = arith.constant 0 : index
    %7 = vector.load %arg8[%c0_5, %c0_6] : memref<2x32xf32, #tpu.memory_space<vmem>>, vector<2x32xf32>
    tpu.vector_store %arg8[%c0_5, %c0_6], %6 {strides = array<i32>} : memref<2x32xf32, #tpu.memory_space<vmem>>, vector<2x32xf32>,
    %c0_i32_7 = arith.constant 0 : i32
    %8 = arith.cmpi eq, %arg1, %c0_i32_7 : i32
    %9 = arith.extui %8 : i1 to i32
    %c0_i32_8 = arith.constant 0 : i32
    %10 = arith.cmpi ne, %9, %c0_i32_8 : i32
    scf.if %10 {
      %c0_9 = arith.constant 0 : index
      %c0_10 = arith.constant 0 : index
      %11 = vector.load %arg8[%c0_9, %c0_10] : memref<2x32xf32, #tpu.memory_space<vmem>>, vector<2x32xf32>
      %cst_11 = arith.constant 1.250000e-01 : f32
      %12 = vector.broadcast %cst_11 : f32 to vector<2x32xf32>
      %13 = arith.mulf %11, %12 : vector<2x32xf32>
      %c0_12 = arith.constant 0 : index
      %c0_13 = arith.constant 0 : index
      %14 = vector.load %arg3[%c0_12, %c0_13] : memref<32x32xf32, #tpu.memory_space<vmem>>, vector<32x32xf32>
      %cst_14 = arith.constant dense<0.000000e+00> : vector<2x32xf32>
      %15 = tpu.matmul %13, %14, %cst_14 {dimension_numbers = #tpu.dot_dimension_numbers<[1], [1], [0], [0], [0, 0, 1, 0], [], []>} : vector<2x32xf32>, vector<32x32xf32>, vector<2x32xf32> -> vector<2x32xf32>
      %c0_15 = arith.constant 0 : index
      %c0_16 = arith.constant 0 : index
      %16 = vector.load %arg4[%c0_15, %c0_16] : memref<1x32xf32, #tpu.memory_space<vmem>>, vector<1x32xf32>
      %17 = vector.broadcast %16 : vector<1x32xf32> to vector<2x32xf32>
      %18 = arith.addf %15, %17 : vector<2x32xf32>
      %19 = math.tanh %18 : vector<2x32xf32>
      %c0_17 = arith.constant 0 : index
      %c0_18 = arith.constant 0 : index
      %20 = vector.load %arg5[%c0_17, %c0_18] : memref<5x32xf32, #tpu.memory_space<vmem>>, vector<5x32xf32>
      %cst_19 = arith.constant dense<0.000000e+00> : vector<2x5xf32>
      %21 = tpu.matmul %19, %20, %cst_19 {dimension_numbers = #tpu.dot_dimension_numbers<[1], [1], [0], [0], [0, 0, 1, 0], [], []>} : vector<2x32xf32>, vector<5x32xf32>, vector<2x5xf32> -> vector<2x5xf32>
      %c0_20 = arith.constant 0 : index
      %c0_21 = arith.constant 0 : index
      %22 = vector.load %arg6[%c0_20, %c0_21] : memref<1x5xf32, #tpu.memory_space<vmem>>, vector<1x5xf32>
      %23 = vector.broadcast %22 : vector<1x5xf32> to vector<2x5xf32>
      %24 = arith.addf %21, %23 : vector<2x5xf32>
      %c0_22 = arith.constant 0 : index
      %c0_23 = arith.constant 0 : index
      %25 = vector.load %arg7[%c0_22, %c0_23] : memref<2x5xf32, #tpu.memory_space<vmem>>, vector<2x5xf32>
      tpu.vector_store %arg7[%c0_22, %c0_23], %24 {strides = array<i32>} : memref<2x5xf32, #tpu.memory_space<vmem>>, vector<2x5xf32>,
    } else {
    }
    return
  }
  func.func @transform_0(%arg0: i32, %arg1: i32) -> (i32, i32, i32) {
    %c0_i32 = arith.constant 0 : i32
    %c0_i32_0 = arith.constant 0 : i32
    return %arg0, %arg1, %c0_i32 : i32, i32, i32
  }
  func.func @transform_1(%arg0: i32, %arg1: i32) -> (i32, i32) {
    %c0_i32 = arith.constant 0 : i32
    %c0_i32_0 = arith.constant 0 : i32
    %c0_i32_1 = arith.constant 0 : i32
    return %c0_i32, %c0_i32_0 : i32, i32
  }
  func.func @transform_2(%arg0: i32, %arg1: i32) -> (i32, i32) {
    %c0_i32 = arith.constant 0 : i32
    %c0_i32_0 = arith.constant 0 : i32
    %c0_i32_1 = arith.constant 0 : i32
    return %c0_i32, %c0_i32_0 : i32, i32
  }
  func.func @transform_3(%arg0: i32, %arg1: i32) -> (i32, i32) {
    %c0_i32 = arith.constant 0 : i32
    %c0_i32_0 = arith.constant 0 : i32
    %c0_i32_1 = arith.constant 0 : i32
    return %c0_i32, %c0_i32_0 : i32, i32
  }
  func.func @transform_4(%arg0: i32, %arg1: i32) -> (i32, i32) {
    %c0_i32 = arith.constant 0 : i32
    %c0_i32_0 = arith.constant 0 : i32
    %c0_i32_1 = arith.constant 0 : i32
    return %c0_i32, %c0_i32_0 : i32, i32
  }
  func.func @transform_5(%arg0: i32, %arg1: i32) -> (i32, i32) {
    %c0_i32 = arith.constant 0 : i32
    %c0_i32_0 = arith.constant 0 : i32
    return %arg0, %c0_i32 : i32, i32
  }
}

</mosaic_0001>

<bundles_post_ra>
// kernel: tpu_custom_call.1
= control target key start
LH: loop header
LB: loop body
LE: loop exit
PB: predicated region body
PF: predicated region fallthrough
CT: control target
= control target key end

     0   :  { %10 = vsyncpa [#allocation4], 0  ;;  %s384_s0 = inlined_call_operand.hbm [shape: f32[2,8,32], index: 0, kind: input, shape index: {}]   ;;  %s385_s1 = inlined_call_operand.hbm [shape: f32[32,32], index: 1, kind: input, shape index: {}]   ;;  %s386_s2 = inlined_call_operand.vmem [shape: f32[1,32], index: 2, kind: input, shape index: {}]   ;;  %s387_s3 = inlined_call_operand.hbm [shape: f32[5,32], index: 3, kind: input, shape index: {}]   ;;  %s388_s4 = inlined_call_operand.vmem [shape: f32[1,5], index: 4, kind: input, shape index: {}]   ;;  %s389_s5 = inlined_call_operand.hbm [shape: f32[2,5], index: 5, kind: output, shape index: {}]  }
   0x1   :  { %11 = vsyncpa [#allocation7], 0 }
   0x2   :  { %12 = vsyncpa [#allocation5], 0  ;;  %s30_s20 = sshll.u32 %s385_s1, 4  ;;  %s318_s21 = smov [#allocation6]   ;;  %s31_s20 = int_to_ptr.hbm [resolvable:$true] %s30_s20 }
   0x3   :  { %s32_s22 = sshll.u32 %s318_s21, 4  ;;  %s17_s25 = sshll.u32 %s384_s0, 4  ;;  %s33_s22 = int_to_ptr.vmem [resolvable:$true] %s32_s22  ;;  %s18_s25 = int_to_ptr.hbm [resolvable:$true] %s17_s25 }
   0x4   :  { %s319_s26 = smov 128   ;;  %s320_s27 = smov 8  }
   0x5   :  { %38 = dma.hbm_to_vmem [thread:$0]  %s31_s20, 512, %s33_s22, [#allocation7], %s319_s26, %s319_s26, %s320_s27  }
   0x6   :  { %s321_s28 = smov [#allocation3]   ;;  %s46_s7 = sshll.u32 %s387_s3, 4  ;;  %s47_s7 = int_to_ptr.hbm [resolvable:$true] %s46_s7 }
   0x7   :  { %s19_s29 = sshll.u32 %s321_s28, 4  ;;  %s322_s1 = smov [#allocation8]   ;;  %s20_s29 = int_to_ptr.vmem [resolvable:$true] %s19_s29 }
   0x8   :  { %25 = dma.hbm_to_vmem [thread:$0]  %s18_s25, 256, %s20_s29, [#allocation4], %s319_s26, %s319_s26, %s320_s27  }
   0x9   :  { %s48_s8 = sshll.u32 %s322_s1, 4  ;;  %s49_s8 = int_to_ptr.vmem [resolvable:$true] %s48_s8 }
   0xa   :  { %51 = dma.hbm_to_vmem [thread:$0]  %s47_s7, 128, %s49_s8, [#allocation7]  }
   0xb   :  { %312 = dma.done.wait [#allocation4], 256  }
   0xc   :  { %313 = vsyncadd [#allocation4], 4294967040 }
   0xd   :  { %314 = dma.done.wait [#allocation7], 640  }
   0xe   :  { %315 = vsyncadd [#allocation7], 4294966656  ;;  %vm70_vm0 = vcmask 254976   ;;  %v323_v0 = vmov 0.0   ;;  %vm75_vm1 = vcmask 261120   ;;  %v72_v1 = vld [vmem:[#allocation3] sm:$0xff] }
   0xf   :  { %71 = vst.msk [vmem:[#allocation2] sm:$0x3] %vm70_vm0, %v323_v0  ;;  %v73_v2 = vld [vmem:[#allocation3 + $0x8] sm:$0xff]  ;;  %v76_v4 = vsel %vm75_vm1, %v72_v1, 0.0  ;;  %v105_v8 = vld [vmem:[#allocation6 + $0x10] sm:$0xff]  ;;  %v104_v13 = vld [vmem:[#allocation6 + $0x8] sm:$0xff] }
  0x10   :  { %v106_v3 = vld [vmem:[#allocation6 + $0x18] sm:$0xff]  ;;  %v83_v5 = vsel %vm75_vm1, %v73_v2, 0.0  ;;  %v77_v6 = vrot.slane %v76_v4, 4  ;;  %v103_v18 = vld [vmem:[#allocation6] sm:$0xff]  ;;  %vm92_vm2 = vcmask 1041409   ;;  %s324_s11 = smov [#allocation9]  }
  0x11   :  { %198 = vmatpush.xpose.msk.msra.mxu0 %vm75_vm1, %v106_v3  ;;  %v84_v7 = vrot.slane %v83_v5, 4  ;;  %v147_v26 = vld [vmem:[#allocation8] sm:$0x1f]  ;;  %v212_v27 = vld [vmem:[%s386_s2] ss:$0 sm:$0xff]  ;;  %s185_s12 = sshll.u32 %s324_s11, 4  ;;  %s186_s12 = int_to_ptr.vmem [resolvable:$true] %s185_s12 }
  0x12   :  { %v78_v9 = vadd.f32 %v77_v6, %v76_v4  ;;  %203 = vmatpush.xpose.msk.msra.mxu1 %vm75_vm1, %v147_v26  ;;  %v213_v31 = vld [vmem:[%s388_s4] ss:$0 sm:$0xff]  ;;  %s187_s15 = sshll.u32 %s389_s5, 4  ;;  %vm178_vm3 = vcmask 33792   ;;  %s188_s15 = int_to_ptr.hbm [resolvable:$true] %s187_s15 }
  0x13   :  { %v85_v10 = vadd.f32 %v84_v7, %v83_v5 }
  0x14   :  { %v79_v11 = vrot.slane %v78_v9, 2 }
  0x15   :  { %199 = vmatpush.xpose.msk.msra.mxu0 %vm75_vm1, %v105_v8  ;;  %v86_v12 = vrot.slane %v85_v10, 2 }
  0x16   :  { %v80_v14 = vadd.f32 %v79_v11, %v78_v9  ;;  %v74_v21 = vld [vmem:[#allocation2] sm:$0x3] }
  0x17   :  { %v87_v15 = vadd.f32 %v86_v12, %v85_v10 }
  0x18   :  { %v81_v16 = vrot.slane %v80_v14, 1 }
  0x19   :  { %200 = vmatpush.xpose.msk.msra.mxu0 %vm75_vm1, %v104_v13  ;;  %v88_v17 = vrot.slane %v87_v15, 1 }
  0x1a   :  { %v82_v19 = vadd.f32 %v81_v16, %v80_v14 }
  0x1b   :  { %v89_v20 = vadd.f32 %v88_v17, %v87_v15 }
  0x1d   :  { %201 = vmatpush.xpose.msk.msra.mxu0 %vm75_vm1, %v103_v18  ;;  %v93_v22 = vsel %vm92_vm2, %v89_v20, %v82_v19 }
  0x1e   :  { %v95_v23 = vadd.f32 %v93_v22, %v74_v21 }
  0x20   :  { %97 = vst.msk [vmem:[#allocation2] sm:$0x3] %vm70_vm0, %v95_v23 }
  0x27   :  { %v101_v24 = vld [vmem:[#allocation2] sm:$0x3] }
  0x28   :  { %v102_v25 = vmul.f32 0.125, %v101_v24 }
  0x2a   :  { %202 = vmatmul.msk.f32.vlgmr.msra.gmra.mxu0 %vm75_vm1, %v102_v25 }
  0xa7   :  { %v143_v28 = vpop.f32.mrf.mxu0 }
  0xa8   :  { %v144_v29 = vadd.f32 %v212_v27, %v143_v28 }
  0xaa   :  { %214 = vtanh.f32 %v144_v29 }
  0xb0   :  { %v215_v30 = vpop.eup %214 }
  0xb1   :  { %204 = vmatmul.msk.f32.vlgmr.msra.gmra.mxu1 %vm75_vm1, %v215_v30 }
 0x12e   :  { %v175_v32 = vpop.f32.mrf.mxu1 }
 0x12f   :  { %v176_v33 = vadd.f32 %v213_v31, %v175_v32 }
 0x131   :  { %179 = vst.msk [vmem:[#allocation9] sm:$0x3] %vm178_vm3, %v176_v33 }
 0x132   :  { %190 = dma.vmem_to_hbm [thread:$0]  %s186_s12, 32, %s188_s15, [#allocation5]  }
 0x133   :  { %316 = dma.done.wait [#allocation5], 32  }
 0x134   :  { %317 = vsyncadd [#allocation5], 4294967264 }
 0x135   :  { %195 = vsyncpa [#allocation4], 1 }
 0x136   :  { %196 = vsyncpa [#allocation7], 1 }
 0x137   :  { %197 = vsyncpa [#allocation5], 1 }

</bundles_post_ra>
